<compile_context>
chip_gen: v6e
topology: v6e:2x2x1
jax: 0.10.0
libtpu: 0.0.40
codegen_flags: <defaults>
</compile_context>

<pallas_src>
import functools

import jax
import jax.numpy as jnp
from jax.experimental import pallas as pl
from jax.experimental.pallas import tpu as pltpu


def _round_up(v, m):
    return ((v + m - 1) // m) * m


def _gnn_propagate_kernel(es_ref, x_ref, out_ref, a_acc_ref, *, agg: str,
                          node_block: int):
    # es_ref : [2, TE]    int32; row 0 = col (destination), row 1 = row (source)
    # x_ref  : [Np, D]    float32, all (padded) node embeddings
    # out_ref: [TN, 2*D]  float32, output rows owned by this node block
    # a_acc  : [TN, Np]   float32 scratch, adjacency accumulator
    nb = pl.program_id(0)            # destination-node block ("parallel")
    eb = pl.program_id(1)            # edge block             ("arbitrary")
    num_eb = pl.num_programs(1)

    TN = node_block
    TE = es_ref.shape[1]
    Np, D = x_ref.shape

    @pl.when(eb == 0)
    def _init():
        a_acc_ref[...] = jnp.zeros_like(a_acc_ref)

    col = es_ref[0:1, :]             # [1, TE] destination (scatter) indices
    row = es_ref[1:2, :]             # [1, TE] source (gather) indices

    # One-hot selection tiles in bf16 (0/1 exact).  Padded edges carry the
    # out-of-range sentinel Np, which never matches -> all-zero columns.
    n0 = nb * TN
    dst_iota = jax.lax.broadcasted_iota(jnp.int32, (TN, TE), 0) + n0
    src_iota = jax.lax.broadcasted_iota(jnp.int32, (Np, TE), 0)
    s_dst = (dst_iota == col).astype(jnp.bfloat16)      # [TN, TE]
    s_src = (src_iota == row).astype(jnp.bfloat16)      # [Np, TE]

    # A[n, m] += #edges in this tile with col == n0+n and row == m.
    # Contraction over the (large) edge-tile dim: bf16 MXU feed, f32 acc.
    a_acc_ref[...] += jax.lax.dot_general(
        s_dst, s_src, (((1,), (1,)), ((), ())),
        preferred_element_type=jnp.float32)

    @pl.when(eb == num_eb - 1)
    def _finalize():
        a = a_acc_ref[...]                                        # [TN, Np]
        indeg = jnp.sum(a, axis=1, keepdims=True)                 # [TN, 1]
        # x rows owned by this destination block (for the x[col] half).
        x_blk = x_ref[pl.ds(pl.multiple_of(nb * TN, TN), TN), :]  # [TN, D]

        # First half of msg: sum of x[row[e]] over incoming edges (A @ x).
        sum_i = jnp.dot(a, x_ref[...], preferred_element_type=jnp.float32)

        if agg == 'mean':
            inv = pl.reciprocal(jnp.maximum(indeg, 1.0))          # [TN, 1]
            out_i = sum_i * inv
            # mean of indeg copies of x[n] is x[n]; 0 if no incoming edge.
            out_o = (indeg > 0.0).astype(jnp.float32) * x_blk
        else:  # 'add'
            out_i = sum_i
            out_o = indeg * x_blk

        out_ref[...] = jnp.concatenate([out_i, out_o],
                                       axis=-1).astype(out_ref.dtype)


def gnn_propagate(x: jax.Array, es: jax.Array, agg: str = 'mean', *,
                  edge_block=None, node_block=None) -> jax.Array:
    """Pallas TPU equivalent of GNN.propagate(x, es, agg) with option='o2i'."""
    assert agg in ('mean', 'add')
    # TODO(synk): 'max' aggregation (masked segment-max) not implemented.
    N, D = x.shape
    E = es.shape[1]

    # ---- tile sizes --------------------------------------------------------
    # Edge tile: lane/MXU aligned (multiple of 128).  Sized so the two bf16
    # one-hot tiles + the f32 adjacency accumulator + double-buffered es tiles
    # stay far below the default scoped-VMEM limit (safe on v5e/v6e and on
    # v7x's smaller 64 MiB VMEM).
    if edge_block is None:
        edge_block = min(2048, _round_up(max(E, 1), 128))
    TE = edge_block
    E_pad = _round_up(max(E, 1), TE)

    # Destination-node tile: sublane aligned (multiple of 8); this is also the
    # "parallel" grid axis megacore shards across v7x's two TensorCores.
    if node_block is None:
        node_block = min(_round_up(max(N, 1), 8), 256)
    TN = node_block
    N_pad = _round_up(N, TN)

    # ---- padding -----------------------------------------------------------
    # Padded edges get the sentinel index N_pad (out of range) -> all-zero
    # one-hot columns -> no contribution.  Padded nodes have zero in-degree.
    x_pad = x.astype(jnp.float32)
    if N_pad != N:
        x_pad = jnp.pad(x_pad, ((0, N_pad - N), (0, 0)))
    es_pad = jnp.full((2, E_pad), N_pad, dtype=jnp.int32)
    es_pad = es_pad.at[:, :E].set(es.astype(jnp.int32))

    grid = (N_pad // TN, E_pad // TE)
    kernel = functools.partial(_gnn_propagate_kernel, agg=agg, node_block=TN)

    out = pl.pallas_call(
        kernel,
        out_shape=jax.ShapeDtypeStruct((N_pad, 2 * D), jnp.float32),
        grid_spec=pltpu.PrefetchScalarGridSpec(
            num_scalar_prefetch=0,
            grid=grid,
            in_specs=[
                pl.BlockSpec((2, TE), lambda nb, eb: (0, eb)),     # edge tile
                # TODO(synk): source-node dim kept fully VMEM-resident; tile it
                # as well for graphs with very large N.
                pl.BlockSpec((N_pad, D), lambda nb, eb: (0, 0)),   # all nodes
            ],
            out_specs=pl.BlockSpec((TN, 2 * D), lambda nb, eb: (nb, 0)),
            scratch_shapes=[pltpu.VMEM((TN, N_pad), jnp.float32)],
        ),
        compiler_params=pltpu.CompilerParams(
            dimension_semantics=("parallel", "arbitrary")),
        cost_estimate=pl.CostEstimate(
            flops=2 * N_pad * N_pad * (E_pad + D),
            transcendentals=N_pad if agg == 'mean' else 0,
            bytes_accessed=(es_pad.size * 4 + x_pad.size * 4
                            + N_pad * 2 * D * 4)),
    )(es_pad, x_pad)

    return out[:N]


def _reference_propagate(x, es, agg='mean'):
    """Pure-JAX reference matching the PyTorch module exactly."""
    col, row = es[0], es[1]
    msg = jnp.concatenate([x[row], x[col]], axis=-1)          # [E, 2*D]
    N = x.shape[0]
    sums = jax.ops.segment_sum(msg, col, num_segments=N)      # [N, 2*D]
    if agg == 'add':
        return sums
    counts = jax.ops.segment_sum(jnp.ones((es.shape[1],), jnp.float32),
                                 col, num_segments=N)
    return sums / jnp.maximum(counts, 1.0)[:, None]


if __name__ == "__main__":
    key = jax.random.PRNGKey(0)

    # Small synthetic graph: 8 nodes, 32-dim embeddings, fully-connected
    # directed edges without self-loops (E = 8*7 = 56).
    N, D = 8, 32
    kx, _ = jax.random.split(key)
    x = jax.random.normal(kx, (N, D), dtype=jnp.float32)

    senders, receivers = [], []
    for a in range(N):
        for b in range(N):
            if a != b:
                senders.append(a)
                receivers.append(b)
    es = jnp.array([senders, receivers], dtype=jnp.int32)     # [2, E]

    out = jax.block_until_ready(gnn_propagate(x, es, agg='mean'))
    ref = _reference_propagate(x, es, agg='mean')
    assert out.shape == (N, 2 * D)
    assert jnp.allclose(out, ref, atol=1e-5, rtol=1e-5), "mean mismatch vs reference"

    out_add = jax.block_until_ready(gnn_propagate(x, es, agg='add'))
    ref_add = _reference_propagate(x, es, agg='add')
    assert jnp.allclose(out_add, ref_add, atol=1e-5, rtol=1e-5), "add mismatch vs reference"

    print("KERNEL_OK")
</pallas_src>

<mosaic_0001>
module attributes {stable_mosaic.version = 11 : i64} {
  func.func @_gnn_propagate_kernel(%arg0: i32, %arg1: i32, %arg2: memref<2x128xi32, #tpu.memory_space<vmem>>, %arg3: memref<8x32xf32, #tpu.memory_space<vmem>>, %arg4: memref<8x64xf32, #tpu.memory_space<vmem>>, %arg5: memref<8x8xf32, #tpu.memory_space<vmem>>) attributes {dimension_semantics = [#tpu.dimension_semantics<parallel>, #tpu.dimension_semantics<arbitrary>], iteration_bounds = array<i64: 1, 1>, scalar_prefetch = 0 : i64, scratch_operands = 1 : i64, tpu.core_type = #tpu.core_type<tc>, window_params = [{transform_indices = @transform_0, window_bounds = array<i64: 2, 128>}, {pipeline_mode = #tpu.pipeline_mode<synchronous>, transform_indices = @transform_1, window_bounds = array<i64: 8, 32>}, {transform_indices = @transform_2, window_bounds = array<i64: 8, 64>}]} {
    %c0_i32 = arith.constant 0 : i32
    %0 = arith.cmpi eq, %arg1, %c0_i32 : i32
    %1 = arith.extui %0 : i1 to i32
    %c0_i32_0 = arith.constant 0 : i32
    %2 = arith.cmpi ne, %1, %c0_i32_0 : i32
    scf.if %2 {
      %cst_9 = arith.constant 0.000000e+00 : f32
      %27 = vector.broadcast %cst_9 : f32 to vector<8x8xf32>
      %c0_10 = arith.constant 0 : index
      %c0_11 = arith.constant 0 : index
      %28 = vector.load %arg5[%c0_10, %c0_11] : memref<8x8xf32, #tpu.memory_space<vmem>>, vector<8x8xf32>
      tpu.vector_store %arg5[%c0_10, %c0_11], %27 {strides = array<i32>} : memref<8x8xf32, #tpu.memory_space<vmem>>, vector<8x8xf32>,
    } else {
    }
    %c0 = arith.constant 0 : index
    %c0_1 = arith.constant 0 : index
    %3 = vector.load %arg2[%c0, %c0_1] : memref<2x128xi32, #tpu.memory_space<vmem>>, vector<1x128xi32>
    %c1 = arith.constant 1 : index
    %c0_2 = arith.constant 0 : index
    %4 = vector.load %arg2[%c1, %c0_2] : memref<2x128xi32, #tpu.memory_space<vmem>>, vector<1x128xi32>
    %c8_i32 = arith.constant 8 : i32
    %5 = arith.muli %arg0, %c8_i32 : i32
    %6 = tpu.iota {dimensions = array<i32: 0>} : vector<8x128xi32>
    %7 = vector.broadcast %5 : i32 to vector<8x128xi32>
    %8 = arith.addi %6, %7 : vector<8x128xi32>
    %9 = tpu.iota {dimensions = array<i32: 0>} : vector<8x128xi32>
    %10 = vector.broadcast %3 : vector<1x128xi32> to vector<8x128xi32>
    %11 = arith.cmpi eq, %8, %10 : vector<8x128xi32>
    %12 = arith.extui %11 : vector<8x128xi1> to vector<8x128xi32>
    %13 = arith.sitofp %12 : vector<8x128xi32> to vector<8x128xf32>
    %14 = arith.truncf %13 : vector<8x128xf32> to vector<8x128xbf16>
    %15 = vector.broadcast %4 : vector<1x128xi32> to vector<8x128xi32>
    %16 = arith.cmpi eq, %9, %15 : vector<8x128xi32>
    %17 = arith.extui %16 : vector<8x128xi1> to vector<8x128xi32>
    %18 = arith.sitofp %17 : vector<8x128xi32> to vector<8x128xf32>
    %19 = arith.truncf %18 : vector<8x128xf32> to vector<8x128xbf16>
    %c0_3 = arith.constant 0 : index
    %c0_4 = arith.constant 0 : index
    %20 = vector.load %arg5[%c0_3, %c0_4] : memref<8x8xf32, #tpu.memory_space<vmem>>, vector<8x8xf32>
    %cst = arith.constant dense<0.000000e+00> : vector<8x8xf32>
    %21 = tpu.matmul %14, %19, %cst {dimension_numbers = #tpu.dot_dimension_numbers<[1], [1], [0], [0], [0, 0, 1, 0], [], []>} : vector<8x128xbf16>, vector<8x128xbf16>, vector<8x8xf32> -> vector<8x8xf32>
    %22 = arith.addf %20, %21 : vector<8x8xf32>
    %c0_5 = arith.constant 0 : index
    %c0_6 = arith.constant 0 : index
    %23 = vector.load %arg5[%c0_5, %c0_6] : memref<8x8xf32, #tpu.memory_space<vmem>>, vector<8x8xf32>
    tpu.vector_store %arg5[%c0_5, %c0_6], %22 {strides = array<i32>} : memref<8x8xf32, #tpu.memory_space<vmem>>, vector<8x8xf32>,
    %c0_i32_7 = arith.constant 0 : i32
    %24 = arith.cmpi eq, %arg1, %c0_i32_7 : i32
    %25 = arith.extui %24 : i1 to i32
    %c0_i32_8 = arith.constant 0 : i32
    %26 = arith.cmpi ne, %25, %c0_i32_8 : i32
    scf.if %26 {
      %c0_9 = arith.constant 0 : index
      %c0_10 = arith.constant 0 : index
      %27 = vector.load %arg5[%c0_9, %c0_10] : memref<8x8xf32, #tpu.memory_space<vmem>>, vector<8x8xf32>
      %cst_11 = arith.constant dense<0.000000e+00> : vector<8xf32>
      %28 = vector.multi_reduction <add>, %27, %cst_11 [1] : vector<8x8xf32> to vector<8xf32>
      %29 = vector.shape_cast %28 : vector<8xf32> to vector<8x1xf32>
      %c8_i32_12 = arith.constant 8 : i32
      %30 = arith.muli %arg0, %c8_i32_12 : i32
      %31 = tpu.assume_multiple %30, 8 : i32
      %32 = arith.index_cast %31 : i32 to index
      %c0_13 = arith.constant 0 : index
      %33 = vector.load %arg3[%32, %c0_13] : memref<8x32xf32, #tpu.memory_space<vmem>>, vector<8x32xf32>
      %c0_14 = arith.constant 0 : index
      %c0_15 = arith.constant 0 : index
      %34 = vector.load %arg3[%c0_14, %c0_15] : memref<8x32xf32, #tpu.memory_space<vmem>>, vector<8x32xf32>
      %cst_16 = arith.constant dense<0.000000e+00> : vector<8x32xf32>
      %35 = tpu.matmul %27, %34, %cst_16 {dimension_numbers = #tpu.dot_dimension_numbers<[1], [0], [0], [1], [0, 0, 1, 1], [], []>} : vector<8x8xf32>, vector<8x32xf32>, vector<8x32xf32> -> vector<8x32xf32>
      %cst_17 = arith.constant 1.000000e+00 : f32
      %36 = vector.broadcast %cst_17 : f32 to vector<8x1xf32>
      %37 = arith.maximumf %29, %36 : vector<8x1xf32>
      %38 = tpu.reciprocal %37 : vector<8x1xf32> -> vector<8x1xf32>
      %39 = vector.broadcast %38 : vector<8x1xf32> to vector<8x32xf32>
      %40 = arith.mulf %35, %39 : vector<8x32xf32>
      %cst_18 = arith.constant 0.000000e+00 : f32
      %41 = vector.broadcast %cst_18 : f32 to vector<8x1xf32>
      %42 = arith.cmpf ogt, %29, %41 : vector<8x1xf32>
      %43 = arith.extui %42 : vector<8x1xi1> to vector<8x1xi32>
      %44 = arith.sitofp %43 : vector<8x1xi32> to vector<8x1xf32>
      %45 = vector.broadcast %44 : vector<8x1xf32> to vector<8x32xf32>
      %46 = arith.mulf %45, %33 : vector<8x32xf32>
      %47 = tpu.concatenate %40, %46 in 1 : vector<8x32xf32>, vector<8x32xf32> -> vector<8x64xf32>
      %c0_19 = arith.constant 0 : index
      %c0_20 = arith.constant 0 : index
      %48 = vector.load %arg4[%c0_19, %c0_20] : memref<8x64xf32, #tpu.memory_space<vmem>>, vector<8x64xf32>
      tpu.vector_store %arg4[%c0_19, %c0_20], %47 {strides = array<i32>} : memref<8x64xf32, #tpu.memory_space<vmem>>, vector<8x64xf32>,
    } else {
    }
    return
  }
  func.func @transform_0(%arg0: i32, %arg1: i32) -> (i32, i32) {
    %c0_i32 = arith.constant 0 : i32
    %c0_i32_0 = arith.constant 0 : i32
    return %c0_i32, %arg1 : i32, i32
  }
  func.func @transform_1(%arg0: i32, %arg1: i32) -> (i32, i32) {
    %c0_i32 = arith.constant 0 : i32
    %c0_i32_0 = arith.constant 0 : i32
    %c0_i32_1 = arith.constant 0 : i32
    return %c0_i32, %c0_i32_0 : i32, i32
  }
  func.func @transform_2(%arg0: i32, %arg1: i32) -> (i32, i32) {
    %c0_i32 = arith.constant 0 : i32
    %c0_i32_0 = arith.constant 0 : i32
    return %arg0, %c0_i32 : i32, i32
  }
}

</mosaic_0001>

<bundles_post_ra>
// kernel: tpu_custom_call.1
= control target key start
LH: loop header
LB: loop body
LE: loop exit
PB: predicated region body
PF: predicated region fallthrough
CT: control target
= control target key end

     0   :  { %7 = vsyncpa [#allocation4], 0  ;;  %s359_s0 = inlined_call_operand.hbm [shape: s32[2,128], index: 0, kind: input, shape index: {}]   ;;  %s360_s1 = inlined_call_operand.hbm [shape: f32[8,32], index: 1, kind: input, shape index: {}]   ;;  %s361_s2 = inlined_call_operand.hbm [shape: f32[8,64], index: 2, kind: output, shape index: {}]  }
   0x1   :  { %8 = vsyncpa [#allocation7], 0 }
   0x2   :  { %9 = vsyncpa [#allocation5], 0  ;;  %s324_s9 = smov [#allocation3]   ;;  %s325_s11 = smov [#allocation6]  }
   0x3   :  { %s16_s10 = sshll.u32 %s324_s9, 4  ;;  %s26_s12 = sshll.u32 %s325_s11, 4  ;;  %s17_s10 = int_to_ptr.vmem [resolvable:$true] %s16_s10  ;;  %s27_s12 = int_to_ptr.vmem [resolvable:$true] %s26_s12 }
   0x4   :  { %s266_s13 = scalar_lea.vmem %s17_s10, 32  ;;  %p271_p1 = scmp.lt.s32.totalorder %s17_s10, %s17_s10 }
   0x5   :  { %p267_p0 = scmp.ne.s32.totalorder %s17_s10, %s266_s13  ;;  %p272_p2 = scmp.lt.s32.totalorder %s266_s13, %s266_s13 }
   0x7   :  { %p273_p3 = por %p272_p2, %p271_p1 }
   0x9   :  { %p274_p4 = pnand %p273_p3, %p267_p0 }
   0xb   :  { %277 = shalt.err (!%p274_p4)
}
   0xc   :  { %19 = dma.hbm_to_vmem [thread:$0]  %s359_s0, 32, %s17_s10, [#allocation4]  }
   0xd   :  { %s286_s16 = scalar_lea.vmem %s27_s12, 128  ;;  %p291_p6 = scmp.lt.s32.totalorder %s27_s12, %s27_s12 }
   0xe   :  { %p287_p5 = scmp.ne.s32.totalorder %s27_s12, %s286_s16  ;;  %p292_p7 = scmp.lt.s32.totalorder %s286_s16, %s286_s16 }
  0x10   :  { %p293_p8 = por %p292_p7, %p291_p6 }
  0x12   :  { %p294_p9 = pnand %p293_p8, %p287_p5 }
  0x14   :  { %297 = shalt.err (!%p294_p9)
}
  0x15   :  { %29 = dma.hbm_to_vmem [thread:$0]  %s360_s1, 128, %s27_s12, [#allocation7]  }
  0x16   :  { %318 = dma.done.wait [#allocation4], 32  }
  0x17   :  { %319 = vsyncadd [#allocation4], 4294967264 }
  0x18   :  { %320 = dma.done.wait [#allocation7], 128  }
  0x19   :  { %321 = vsyncadd [#allocation7], 4294967168  ;;  %v46_v0 = vlaneseq  ;;  %v326_v1 = vmov 0.0   ;;  %vm327_vm0 = vmmov 0   ;;  %vm41_vm1 = vcmask 64512   ;;  %v119_v6 = vld [vmem:[#allocation6] sm:$0xff] }
  0x1a   :  { %238 = vmatprep.subr.bf16.mxu0 %v326_v1  ;;  %240 = vmatprep.mubr.msk.bf16.mxu0 %vm327_vm0, %v326_v1  ;;  %42 = vst.msk [vmem:[#allocation2] sm:$0xff] %vm41_vm1, %v326_v1  ;;  %v226_v3 = vld [vmem:[#allocation3 + $0x1] ss:$0 sm:$0xff]  ;;  %v224_v4 = vld [vmem:[#allocation3] ss:$0 sm:$0xff]  ;;  %s329_s0 = smov 32  }
  0x1b   :  { %244 = vmatprep.subr.mxu1 %v326_v1  ;;  %246 = vmatprep.mubr.msk.f32.mxu1 %vm327_vm0, %v326_v1  ;;  %v47_v2 = vshrl.u32 %v46_v0, 7  ;;  %v328_v5 = vmov 1.0|1.0   ;;  %s330_s1 = smov [#allocation8]   ;;  %vm204_vm7 = vcmask 261120   ;;  %vm206_vm8 = vcmask 523264  }
  0x1c   :  { %245 = vmatpush3.msra.mxu1 %v119_v6  ;;  %s214_s19 = sshll.u32 %s330_s1, 4  ;;  %s215_s19 = int_to_ptr.vmem [resolvable:$true] %s214_s19 }
  0x1d   :  { %vm62_vm2 = vcmp.eq.s32.totalorder %v47_v2, %v226_v3  ;;  %vm54_vm4 = vcmp.eq.s32.totalorder %v47_v2, %v224_v4  ;;  %s298_s20 = scalar_lea.vmem %s215_s19, 128  ;;  %p303_p11 = scmp.lt.s32.totalorder %s215_s19, %s215_s19 }
  0x1e   :  { %vm228_vm3 = vmpackc.low %vm62_vm2, %vm62_vm2  ;;  %p299_p10 = scmp.ne.s32.totalorder %s215_s19, %s298_s20  ;;  %p304_p12 = scmp.lt.s32.totalorder %s298_s20, %s298_s20 }
  0x1f   :  { %239 = vmatpush3.bf16.xpose.msk.msra.mxu0 %vm228_vm3, %v328_v5  ;;  %vm230_vm5 = vmpackc.low %vm54_vm4, %vm54_vm4 }
  0x20   :  { %p305_p13 = por %p304_p12, %p303_p11 }
  0x21   :  { %v66_v7 = vld [vmem:[#allocation2] sm:$0xff] }
  0x22   :  { %p306_p0 = pnand %p305_p13, %p299_p10 }
  0x26   :  { %241 = vmatmul.mubr.msk.bf16.vlgmr.msra.gmra.mxu0 %vm230_vm5, %v328_v5 }
  0xe6   :  { %v101_v8 = vpop.f32.mrf.mxu0 }
  0xe7   :  { %v107_v9 = vadd.f32 %v101_v8, %v66_v7 }
  0xe8   :  { %v242_v10 = vpop.f32.mrf.mxu0 }
  0xe9   :  { %109 = vst.msk [vmem:[#allocation2] sm:$0xff] %vm41_vm1, %v107_v9 }
  0xea   :  { %v104_v11 = vpop.f32.mrf.mxu0 }
  0xec   :  { %v243_v12 = vpop.f32.mrf.mxu0 }
  0xf0   :  { %v113_v13 = vld [vmem:[#allocation2] sm:$0xff] }
  0xf1   :  { %247 = vmatmul.mubr.msk.f32.vlgmr.msra.gmra.mxu1 %vm41_vm1, %v113_v13  ;;  %v114_v14 = vsel %vm41_vm1, %v113_v13, 0.0 }
  0xf2   :  { %115 = vadd.xlane.f32.xlu0 %v114_v14 }
 0x17b   :  { %v116_v15 = vpop.xlane.xlu0 %115 }
 0x17c   :  { %vm196_vm6 = vcmp.gt.f32.partialorder %v116_v15, 0.0  ;;  %v193_v20 = vmax.f32 %v116_v15, 1.0 }
 0x17d   :  { %v233_v16 = vsel %vm196_vm6, 1.0, %v326_v1 }
 0x17e   :  { %v199_v17 = vmul.f32 %v233_v16, %v119_v6  ;;  %256 = vrcp.f32 %v193_v20 }
 0x180   :  { %201 = vrot.lane.b32.xlu0 %v199_v17, %s329_s0 }
 0x18b   :  { %v257_v21 = vpop.eup %256 }
 0x1b1   :  { %v189_v18 = vpop.f32.mrf.mxu1 }
 0x1b2   :  { %v195_v22 = vmul.f32 %v257_v21, %v189_v18 }
 0x1b3   :  { %v248_v19 = vpop.f32.mrf.mxu1 }
 0x1f2   :  { %v202_v23 = vpop.permute.xlu0 %201 }
 0x1f3   :  { %v205_v24 = vsel %vm204_vm7, %v195_v22, %v202_v23 }
 0x1f4   :  { %207 = vst.msk [vmem:[#allocation8] sm:$0xff] %vm206_vm8, %v205_v24 }
 0x1f5   :  { %309 = shalt.err (!%p306_p0)
}
 0x1f6   :  { %217 = dma.vmem_to_hbm [thread:$0]  %s215_s19, 128, %s361_s2, [#allocation5]  }
 0x1f7   :  { %322 = dma.done.wait [#allocation5], 128  }
 0x1f8   :  { %323 = vsyncadd [#allocation5], 4294967168 }
 0x1f9   :  { %221 = vsyncpa [#allocation4], 1 }
 0x1fa   :  { %222 = vsyncpa [#allocation7], 1 }
 0x1fb   :  { %223 = vsyncpa [#allocation5], 1 }

</bundles_post_ra>
